<compile_context>
chip_gen: v7x
topology: tpu7x:2x2x1
jax: 0.10.0
libtpu: 0.0.40
codegen_flags: <defaults>
</compile_context>

<pallas_src>
import functools

import jax
import jax.numpy as jnp
from jax.experimental import pallas as pl
from jax.experimental.pallas import tpu as pltpu


def _round_up(x, m):
    return (x + m - 1) // m * m


def rnn_seq_kernel(hid_pad,
                   xcat_ref, w1x_ref, w1h_ref, b1_ref, w2_ref, b2m_ref,
                   out_ref, hid_ref, h_scr):
    """One timestep of the fused RNN; grid axis 0 is time (sequential)."""
    t = pl.program_id(0)

    # initHidden(): zero the VMEM-resident hidden carry at t == 0.
    @pl.when(t == 0)
    def _():
        h_scr[...] = jnp.zeros_like(h_scr)

    x = xcat_ref[...]                     # [B, n_cat + in]   (streamed per-t)
    h = h_scr[...]                        # [B, hid_pad]      (VMEM-resident)

    # Fused i2h + i2o, split over the (cat|x) and hidden operands so no
    # per-step concat is needed.  Column layout of `ho` is
    # [hidden (padded to 128) | output (padded to 128)].
    ho = (jnp.dot(x, w1x_ref[...], preferred_element_type=jnp.float32)
          + jnp.dot(h, w1h_ref[...], preferred_element_type=jnp.float32)
          + b1_ref[...])                  # [B, hid_pad + out_pad]

    new_h = ho[:, :hid_pad]               # padded hidden lanes stay exactly 0
    h_scr[...] = new_h                    # recurrence (only dependency of t+1)

    # o2o on the fused block (off the recurrent critical path).
    logits = (jnp.dot(ho, w2_ref[...], preferred_element_type=jnp.float32)
              + b2m_ref[...])             # [B, out_pad]; padded lanes ~ -1e30

    # self.dropout(0.1): identity in eval mode.
    # TODO(synk): training-mode stochastic dropout mask intentionally omitted.

    # self.softmax -> LogSoftmax(dim=1), numerically stable; padded lanes are
    # -1e30 so exp() of them underflows to 0 and they do not corrupt the LSE.
    m = jnp.max(logits, axis=1, keepdims=True)
    shifted = logits - m
    lse = jnp.log(jnp.sum(jnp.exp(shifted), axis=1, keepdims=True))
    out_ref[...] = shifted - lse

    # Final hidden state written back once, at the last timestep.
    @pl.when(t == pl.num_programs(0) - 1)
    def _():
        hid_ref[...] = new_h


def pack_params(params, n_categories, input_size):
    """One-time weight packing / padding (hoisted out of the hot path)."""
    hidden_size, comb = params["w_i2h"].shape
    output_size = params["w_i2o"].shape[0]
    xdim = n_categories + input_size
    assert comb == xdim + hidden_size

    hid_pad = _round_up(hidden_size, 128)
    out_pad = _round_up(output_size, 128)

    # W1 split by operand: x-part [xdim, hid_pad+out_pad], h-part [hid_pad, ...]
    w1x = jnp.zeros((xdim, hid_pad + out_pad), jnp.float32)
    w1x = w1x.at[:, :hidden_size].set(params["w_i2h"][:, :xdim].T)
    w1x = w1x.at[:, hid_pad:hid_pad + output_size].set(params["w_i2o"][:, :xdim].T)

    w1h = jnp.zeros((hid_pad, hid_pad + out_pad), jnp.float32)
    w1h = w1h.at[:hidden_size, :hidden_size].set(params["w_i2h"][:, xdim:].T)
    w1h = w1h.at[:hidden_size, hid_pad:hid_pad + output_size].set(
        params["w_i2o"][:, xdim:].T)

    b1 = jnp.zeros((1, hid_pad + out_pad), jnp.float32)
    b1 = b1.at[0, :hidden_size].set(params["b_i2h"])
    b1 = b1.at[0, hid_pad:hid_pad + output_size].set(params["b_i2o"])

    # o2o on the fused [hidden | output] block.
    w2 = jnp.zeros((hid_pad + out_pad, out_pad), jnp.float32)
    w2 = w2.at[:hidden_size, :output_size].set(params["w_o2o"][:, :hidden_size].T)
    w2 = w2.at[hid_pad:hid_pad + output_size, :output_size].set(
        params["w_o2o"][:, hidden_size:].T)

    # o2o bias with padded output lanes forced to -1e30 (mask fused into bias).
    b2m = jnp.full((1, out_pad), -1e30, jnp.float32)
    b2m = b2m.at[0, :output_size].set(params["b_o2o"])

    return dict(w1x=w1x, w1h=w1h, b1=b1, w2=w2, b2m=b2m,
                hidden_size=hidden_size, output_size=output_size,
                hid_pad=hid_pad, out_pad=out_pad, xdim=xdim)


def rnn_forward_seq(category, xs, packed):
    """Run the whole sequence (T steps) in one fused pallas_call.

    category: [B, n_cat]   xs: [T, B, input_size]
    Returns (log_softmax outputs [T, B, output_size], final hidden [B, hidden]).
    Initial hidden is zeros (initHidden()).
    """
    T, B, _ = xs.shape
    hid_pad, out_pad, xdim = packed["hid_pad"], packed["out_pad"], packed["xdim"]
    hidden_size, output_size = packed["hidden_size"], packed["output_size"]

    # One whole-sequence concat of [category | x_t]; hidden never leaves VMEM.
    cat_b = jnp.broadcast_to(category[None], (T,) + category.shape)
    xcat = jnp.concatenate([cat_b, xs], axis=2)            # [T, B, xdim]

    kernel = functools.partial(rnn_seq_kernel, hid_pad)
    const = lambda t: (0, 0)                                # weights: resident

    outs_pad, hid_final_pad = pl.pallas_call(
        kernel,
        grid=(T,),
        in_specs=[
            pl.BlockSpec((None, B, xdim), lambda t: (t, 0, 0)),   # streamed x_t
            pl.BlockSpec(packed["w1x"].shape, const),
            pl.BlockSpec(packed["w1h"].shape, const),
            pl.BlockSpec(packed["b1"].shape, const),
            pl.BlockSpec(packed["w2"].shape, const),
            pl.BlockSpec(packed["b2m"].shape, const),
        ],
        out_specs=(
            pl.BlockSpec((None, B, out_pad), lambda t: (t, 0, 0)),
            pl.BlockSpec((B, hid_pad), const),
        ),
        out_shape=(
            jax.ShapeDtypeStruct((T, B, out_pad), jnp.float32),
            jax.ShapeDtypeStruct((B, hid_pad), jnp.float32),
        ),
        scratch_shapes=[pltpu.VMEM((B, hid_pad), jnp.float32)],
        compiler_params=pltpu.CompilerParams(
            dimension_semantics=("arbitrary",)),   # time is sequential
    )(xcat, packed["w1x"], packed["w1h"], packed["b1"],
      packed["w2"], packed["b2m"])

    return outs_pad[:, :, :output_size], hid_final_pad[:, :hidden_size]


def rnn_forward_ref(category, xs, params):
    """Pure-JAX reference mirroring the PyTorch forward (eval mode), scanned."""
    B = category.shape[0]
    hidden_size = params["w_i2h"].shape[0]
    h0 = jnp.zeros((B, hidden_size), jnp.float32)

    def step(h, x):
        combined = jnp.concatenate([category, x, h], axis=1)
        new_h = combined @ params["w_i2h"].T + params["b_i2h"]
        output = combined @ params["w_i2o"].T + params["b_i2o"]
        oc = jnp.concatenate([new_h, output], axis=1)
        out = oc @ params["w_o2o"].T + params["b_o2o"]
        out = jax.nn.log_softmax(out, axis=1)
        return new_h, out

    h_final, outs = jax.lax.scan(step, h0, xs)
    return outs, h_final


def init_params(key, n_categories, input_size, hidden_size, output_size):
    """Deterministic PyTorch-style uniform(-1/sqrt(fan_in), 1/sqrt(fan_in)) init."""
    ks = jax.random.split(key, 6)

    def uni(k, shape, fan_in):
        bound = 1.0 / jnp.sqrt(jnp.float32(fan_in))
        return jax.random.uniform(k, shape, jnp.float32, -bound, bound)

    comb = n_categories + input_size + hidden_size
    oc = hidden_size + output_size
    return {
        "w_i2h": uni(ks[0], (hidden_size, comb), comb),
        "b_i2h": uni(ks[1], (hidden_size,), comb),
        "w_i2o": uni(ks[2], (output_size, comb), comb),
        "b_i2o": uni(ks[3], (output_size,), comb),
        "w_o2o": uni(ks[4], (output_size, oc), oc),
        "b_o2o": uni(ks[5], (output_size,), oc),
    }


if __name__ == "__main__":
    n_categories, input_size, hidden_size, output_size = 4, 8, 32, 8
    batch, seq_len = 8, 16

    key = jax.random.PRNGKey(0)
    k_param, k_cat, k_inp = jax.random.split(key, 3)
    params = init_params(k_param, n_categories, input_size, hidden_size, output_size)
    packed = pack_params(params, n_categories, input_size)

    category = jax.random.normal(k_cat, (batch, n_categories), jnp.float32)
    xs = jax.random.normal(k_inp, (seq_len, batch, input_size), jnp.float32)

    outs, hid_final = rnn_forward_seq(category, xs, packed)
    jax.block_until_ready((outs, hid_final))

    outs_ref, hid_ref = rnn_forward_ref(category, xs, params)
    assert jnp.allclose(outs, outs_ref, atol=1e-4, rtol=1e-4), "output mismatch"
    assert jnp.allclose(hid_final, hid_ref, atol=1e-4, rtol=1e-4), "hidden mismatch"

    print("KERNEL_OK")
</pallas_src>

<mosaic_0001>
module attributes {stable_mosaic.version = 11 : i64} {
  func.func @rnn_seq_kernel(%arg0: i32, %arg1: memref<1x8x12xf32, #tpu.memory_space<vmem>>, %arg2: memref<12x256xf32, #tpu.memory_space<vmem>>, %arg3: memref<128x256xf32, #tpu.memory_space<vmem>>, %arg4: memref<1x256xf32, #tpu.memory_space<vmem>>, %arg5: memref<256x128xf32, #tpu.memory_space<vmem>>, %arg6: memref<1x128xf32, #tpu.memory_space<vmem>>, %arg7: memref<1x8x128xf32, #tpu.memory_space<vmem>>, %arg8: memref<8x128xf32, #tpu.memory_space<vmem>>, %arg9: memref<8x128xf32, #tpu.memory_space<vmem>>) attributes {dimension_semantics = [#tpu.dimension_semantics<arbitrary>], iteration_bounds = array<i64: 16>, scalar_prefetch = 0 : i64, scratch_operands = 1 : i64, tpu.core_type = #tpu.core_type<tc>, window_params = [{transform_indices = @transform_0, window_bounds = array<i64: 1, 8, 12>}, {pipeline_mode = #tpu.pipeline_mode<synchronous>, transform_indices = @transform_1, window_bounds = array<i64: 12, 256>}, {pipeline_mode = #tpu.pipeline_mode<synchronous>, transform_indices = @transform_2, window_bounds = array<i64: 128, 256>}, {pipeline_mode = #tpu.pipeline_mode<synchronous>, transform_indices = @transform_3, window_bounds = array<i64: 1, 256>}, {pipeline_mode = #tpu.pipeline_mode<synchronous>, transform_indices = @transform_4, window_bounds = array<i64: 256, 128>}, {pipeline_mode = #tpu.pipeline_mode<synchronous>, transform_indices = @transform_5, window_bounds = array<i64: 1, 128>}, {transform_indices = @transform_6, window_bounds = array<i64: 1, 8, 128>}, {pipeline_mode = #tpu.pipeline_mode<synchronous>, transform_indices = @transform_7, window_bounds = array<i64: 8, 128>}]} {
    %c0_i32 = arith.constant 0 : i32
    %0 = arith.cmpi eq, %arg0, %c0_i32 : i32
    %1 = arith.extui %0 : i1 to i32
    %c0_i32_0 = arith.constant 0 : i32
    %2 = arith.cmpi ne, %1, %c0_i32_0 : i32
    scf.if %2 {
      %cst_25 = arith.constant 0.000000e+00 : f32
      %37 = vector.broadcast %cst_25 : f32 to vector<8x128xf32>
      %c0_26 = arith.constant 0 : index
      %c0_27 = arith.constant 0 : index
      %38 = vector.load %arg9[%c0_26, %c0_27] : memref<8x128xf32, #tpu.memory_space<vmem>>, vector<8x128xf32>
      tpu.vector_store %arg9[%c0_26, %c0_27], %37 {strides = array<i32>} : memref<8x128xf32, #tpu.memory_space<vmem>>, vector<8x128xf32>,
    } else {
    }
    %c0 = arith.constant 0 : index
    %c0_1 = arith.constant 0 : index
    %c0_2 = arith.constant 0 : index
    %3 = vector.load %arg1[%c0, %c0_1, %c0_2] : memref<1x8x12xf32, #tpu.memory_space<vmem>>, vector<1x8x12xf32>
    %4 = vector.shape_cast %3 : vector<1x8x12xf32> to vector<8x12xf32>
    %c0_3 = arith.constant 0 : index
    %c0_4 = arith.constant 0 : index
    %5 = vector.load %arg9[%c0_3, %c0_4] : memref<8x128xf32, #tpu.memory_space<vmem>>, vector<8x128xf32>
    %c0_5 = arith.constant 0 : index
    %c0_6 = arith.constant 0 : index
    %6 = vector.load %arg2[%c0_5, %c0_6] : memref<12x256xf32, #tpu.memory_space<vmem>>, vector<12x256xf32>
    %cst = arith.constant dense<0.000000e+00> : vector<8x256xf32>
    %7 = tpu.matmul %4, %6, %cst {dimension_numbers = #tpu.dot_dimension_numbers<[1], [0], [0], [1], [0, 0, 1, 1], [], []>} : vector<8x12xf32>, vector<12x256xf32>, vector<8x256xf32> -> vector<8x256xf32>
    %c0_7 = arith.constant 0 : index
    %c0_8 = arith.constant 0 : index
    %8 = vector.load %arg3[%c0_7, %c0_8] : memref<128x256xf32, #tpu.memory_space<vmem>>, vector<128x256xf32>
    %cst_9 = arith.constant dense<0.000000e+00> : vector<8x256xf32>
    %9 = tpu.matmul %5, %8, %cst_9 {dimension_numbers = #tpu.dot_dimension_numbers<[1], [0], [0], [1], [0, 0, 1, 1], [], []>} : vector<8x128xf32>, vector<128x256xf32>, vector<8x256xf32> -> vector<8x256xf32>
    %10 = arith.addf %7, %9 : vector<8x256xf32>
    %c0_10 = arith.constant 0 : index
    %c0_11 = arith.constant 0 : index
    %11 = vector.load %arg4[%c0_10, %c0_11] : memref<1x256xf32, #tpu.memory_space<vmem>>, vector<1x256xf32>
    %12 = vector.broadcast %11 : vector<1x256xf32> to vector<8x256xf32>
    %13 = arith.addf %10, %12 : vector<8x256xf32>
    %14 = vector.extract_strided_slice %13 {offsets = [0, 0], sizes = [8, 128], strides = [1, 1]} : vector<8x256xf32> to vector<8x128xf32>
    %c0_12 = arith.constant 0 : index
    %c0_13 = arith.constant 0 : index
    %15 = vector.load %arg9[%c0_12, %c0_13] : memref<8x128xf32, #tpu.memory_space<vmem>>, vector<8x128xf32>
    tpu.vector_store %arg9[%c0_12, %c0_13], %14 {strides = array<i32>} : memref<8x128xf32, #tpu.memory_space<vmem>>, vector<8x128xf32>,
    %c0_14 = arith.constant 0 : index
    %c0_15 = arith.constant 0 : index
    %16 = vector.load %arg5[%c0_14, %c0_15] : memref<256x128xf32, #tpu.memory_space<vmem>>, vector<256x128xf32>
    %cst_16 = arith.constant dense<0.000000e+00> : vector<8x128xf32>
    %17 = tpu.matmul %13, %16, %cst_16 {dimension_numbers = #tpu.dot_dimension_numbers<[1], [0], [0], [1], [0, 0, 1, 1], [], []>} : vector<8x256xf32>, vector<256x128xf32>, vector<8x128xf32> -> vector<8x128xf32>
    %c0_17 = arith.constant 0 : index
    %c0_18 = arith.constant 0 : index
    %18 = vector.load %arg6[%c0_17, %c0_18] : memref<1x128xf32, #tpu.memory_space<vmem>>, vector<1x128xf32>
    %19 = vector.broadcast %18 : vector<1x128xf32> to vector<8x128xf32>
    %20 = arith.addf %17, %19 : vector<8x128xf32>
    %cst_19 = arith.constant dense<0xFF800000> : vector<8xf32>
    %21 = vector.multi_reduction <maximumf>, %20, %cst_19 [1] : vector<8x128xf32> to vector<8xf32>
    %22 = vector.shape_cast %21 : vector<8xf32> to vector<8x1xf32>
    %23 = vector.broadcast %22 : vector<8x1xf32> to vector<8x128xf32>
    %24 = arith.subf %20, %23 : vector<8x128xf32>
    %25 = math.exp %24 : vector<8x128xf32>
    %cst_20 = arith.constant dense<0.000000e+00> : vector<8xf32>
    %26 = vector.multi_reduction <add>, %25, %cst_20 [1] : vector<8x128xf32> to vector<8xf32>
    %27 = vector.shape_cast %26 : vector<8xf32> to vector<8x1xf32>
    %28 = math.log %27 : vector<8x1xf32>
    %29 = vector.broadcast %28 : vector<8x1xf32> to vector<8x128xf32>
    %30 = arith.subf %24, %29 : vector<8x128xf32>
    %c0_21 = arith.constant 0 : index
    %c0_22 = arith.constant 0 : index
    %c0_23 = arith.constant 0 : index
    %31 = vector.load %arg7[%c0_21, %c0_22, %c0_23] : memref<1x8x128xf32, #tpu.memory_space<vmem>>, vector<1x8x128xf32>
    %32 = vector.shape_cast %31 : vector<1x8x128xf32> to vector<8x128xf32>
    %33 = vector.shape_cast %30 : vector<8x128xf32> to vector<1x8x128xf32>
    tpu.vector_store %arg7[%c0_21, %c0_22, %c0_23], %33 {strides = array<i32>} : memref<1x8x128xf32, #tpu.memory_space<vmem>>, vector<1x8x128xf32>,
    %c15_i32 = arith.constant 15 : i32
    %34 = arith.cmpi eq, %arg0, %c15_i32 : i32
    %35 = arith.extui %34 : i1 to i32
    %c0_i32_24 = arith.constant 0 : i32
    %36 = arith.cmpi ne, %35, %c0_i32_24 : i32
    scf.if %36 {
      %c0_25 = arith.constant 0 : index
      %c0_26 = arith.constant 0 : index
      %37 = vector.load %arg8[%c0_25, %c0_26] : memref<8x128xf32, #tpu.memory_space<vmem>>, vector<8x128xf32>
      tpu.vector_store %arg8[%c0_25, %c0_26], %14 {strides = array<i32>} : memref<8x128xf32, #tpu.memory_space<vmem>>, vector<8x128xf32>,
    } else {
    }
    return
  }
  func.func @transform_0(%arg0: i32) -> (i32, i32, i32) {
    %c0_i32 = arith.constant 0 : i32
    %c0_i32_0 = arith.constant 0 : i32
    %c0_i32_1 = arith.constant 0 : i32
    return %arg0, %c0_i32, %c0_i32_0 : i32, i32, i32
  }
  func.func @transform_1(%arg0: i32) -> (i32, i32) {
    %c0_i32 = arith.constant 0 : i32
    %c0_i32_0 = arith.constant 0 : i32
    %c0_i32_1 = arith.constant 0 : i32
    return %c0_i32, %c0_i32_0 : i32, i32
  }
  func.func @transform_2(%arg0: i32) -> (i32, i32) {
    %c0_i32 = arith.constant 0 : i32
    %c0_i32_0 = arith.constant 0 : i32
    %c0_i32_1 = arith.constant 0 : i32
    return %c0_i32, %c0_i32_0 : i32, i32
  }
  func.func @transform_3(%arg0: i32) -> (i32, i32) {
    %c0_i32 = arith.constant 0 : i32
    %c0_i32_0 = arith.constant 0 : i32
    %c0_i32_1 = arith.constant 0 : i32
    return %c0_i32, %c0_i32_0 : i32, i32
  }
  func.func @transform_4(%arg0: i32) -> (i32, i32) {
    %c0_i32 = arith.constant 0 : i32
    %c0_i32_0 = arith.constant 0 : i32
    %c0_i32_1 = arith.constant 0 : i32
    return %c0_i32, %c0_i32_0 : i32, i32
  }
  func.func @transform_5(%arg0: i32) -> (i32, i32) {
    %c0_i32 = arith.constant 0 : i32
    %c0_i32_0 = arith.constant 0 : i32
    %c0_i32_1 = arith.constant 0 : i32
    return %c0_i32, %c0_i32_0 : i32, i32
  }
  func.func @transform_6(%arg0: i32) -> (i32, i32, i32) {
    %c0_i32 = arith.constant 0 : i32
    %c0_i32_0 = arith.constant 0 : i32
    %c0_i32_1 = arith.constant 0 : i32
    return %arg0, %c0_i32, %c0_i32_0 : i32, i32, i32
  }
  func.func @transform_7(%arg0: i32) -> (i32, i32) {
    %c0_i32 = arith.constant 0 : i32
    %c0_i32_0 = arith.constant 0 : i32
    %c0_i32_1 = arith.constant 0 : i32
    return %c0_i32, %c0_i32_0 : i32, i32
  }
}

</mosaic_0001>

<bundles_post_ra>
// kernel: tpu_custom_call.1
= control target key start
LH: loop header
LB: loop body
LE: loop exit
PB: predicated region body
PF: predicated region fallthrough
CT: control target
= control target key end

     0   :  { %13 = vsyncpa [#allocation4], 0  ;;  %s1408_s0 = inlined_call_operand.vmem [shape: f32[16,8,12], index: 0, kind: input, shape index: {}]   ;;  %s1409_s1 = inlined_call_operand.vmem [shape: f32[12,256], index: 1, kind: input, shape index: {}]   ;;  %s1410_s2 = inlined_call_operand.hbm [shape: f32[128,256], index: 2, kind: input, shape index: {}]   ;;  %s1411_s3 = inlined_call_operand.vmem [shape: f32[1,256], index: 3, kind: input, shape index: {}]   ;;  %s1412_s4 = inlined_call_operand.hbm [shape: f32[256,128], index: 4, kind: input, shape index: {}]   ;;  %s1413_s5 = inlined_call_operand.vmem [shape: f32[1,128], index: 5, kind: input, shape index: {}]   ;;  %s1414_s6 = inlined_call_operand.hbm [shape: f32[16,8,128], index: 6, kind: output, shape index: {0}]   ;;  %s1415_s7 = inlined_call_operand.hbm [shape: f32[8,128], index: 7, kind: output, shape index: {1}]  }
   0x1   :  { %14 = vsyncpa [#allocation7], 0 }
   0x2   :  { %15 = vsyncpa [#allocation5], 0 }
   0x3   :  { %17 = vsyncpa [#allocation5 + $0x1], 0 }
   0x4   :  { %18 = vsyncpa [#allocation10], 0  ;;  %s1172_s24 = smov 0   ;;  %s1174_s25 = smov 0  }
   0x5   :  { %s1176_s26 = smov 0   ;;  %s1178_s27 = smov 0  }
   0x6 LB: > { %s1193_s28 = sadd.s32 4294967295, %s1119_s27   ;;  %s756_s29 = sadd.s32 4294967294, %s1119_s27   ;;  %s1119_s27 = sphi %s1178_s27, %s1444_s27   ;;  %s1115_s26 = sphi %s1176_s26, %s1443_s26   ;;  %s1111_s25 = sphi %s1174_s25, %s1442_s25   ;;  %s1107_s24 = sphi %s1172_s24, %s1441_s24  }
   0x7   : > { %s1197_s30 = sadd.s32 1, %s1119_s27   ;;  %s162_s8 = sadd.s32 1, %s1115_s26 }
   0x8   : > { %s159_s9 = ssub.s32 %s1119_s27, %s1197_s30  ;;  %p172_p0 = scmp.ne.s32.totalorder %s1115_s26, %s1111_s25 }
   0x9   : > { %p160_p1 = scmp.eq.s32.totalorder %s159_s9, 0  ;;  %p1416_p2 = scmp.eq.s32.totalorder %s1193_s28, 15 }
   0xa   : > { %p178_p3 = scmp.ne.s32.totalorder %s1111_s25, %s1107_s24  ;;  %p179_p4 = scmp.eq.s32.totalorder %s756_s29, 15 }
   0xb   : > { %s1208_s10 = scalar_select %p160_p1, %s1115_s26, %s162_s8  }
   0xc   : > { %p1212_p5 = por %p1416_p2, %p172_p0  ;;  %p1216_p6 = por %p179_p4, %p178_p3 }
   0xd   : > { %1420 = sst [smem:[#allocation15_spill]] %s1208_s10  ;;  %p757_p7 = scmp.ge.s32.totalorder %s1119_s27, 1 }
   0xe   : > { %s1421_s11 = scalar_select %p1212_p5, 1, 0 }
   0xf   : > { %s1422_s12 = scalar_select %p1216_p6, 1, 0 }
  0x10   : > { %p207_p8 = scmp.lt.s32.totalorder %s1119_s27, 17  ;;  %p1417_p10 = scmp.eq.s32.totalorder %s1193_s28, 0 }
  0x11   : > { %s1121_s14 = smov [#allocation3]   ;;  %s1122_s17 = smov [#allocation6]  }
  0x12   : > { %p1224_p11 = pnand %p757_p7, %p207_p8  ;;  %s222_s15 = sshll.u32 %s1121_s14, 4  ;;  %s223_s15 = int_to_ptr.vmem [resolvable:$true] %s222_s15 }
  0x13   : > { %s238_s18 = sshll.u32 %s1122_s17, 4  ;;  %s963_s21 = scalar_lea.hbm %s1410_s2, 4096  ;;  %s1236_s18 = int_to_ptr.vmem [resolvable:$true] %s238_s18 }
  0x14   : > { %s1423_s13 = scalar_select %p1224_p11, 1, 0 }
  0x15   : > { %p899_p12 = pneg %p1224_p11  ;;  %p964_p0 = scmp.ne.s32.totalorder %s1410_s2, %s963_s21 }
  0x16   : > { %p970_p7 = scmp.lt.u32.totalorder %s963_s21, %s1410_s2 }
  0x17   : > { %p1232_p13 = pnand %p1417_p10, %p899_p12 }
  0x19   : > { %p965_p1 = pneg %p1232_p13 }
  0x1b   : > { %p966_p3 = pnand %p965_p1, %p964_p0 }
  0x1d   : > { %p967_p4 = pneg %p966_p3 }
  0x1f   : > { %p972_p8 = pnand %p970_p7, %p967_p4 }
  0x21   : > { %975 = shalt.err (!%p972_p8)
}
  0x22   : > { %s976_s9 = scalar_lea.vmem %s223_s15, 4096  ;;  %p984_p10 = scmp.lt.s32.totalorder %s223_s15, %s223_s15 }
  0x23   : > { %p977_p12 = scmp.ne.s32.totalorder %s223_s15, %s976_s9  ;;  %p985_p6 = scmp.lt.s32.totalorder %s976_s9, %s976_s9 }
  0x25   : > { %p979_p2 = pnand %p977_p12, %p965_p1  ;;  %p986_p5 = por %p985_p6, %p984_p10 }
  0x27   : > { %p980_p9 = pneg %p979_p2 }
  0x29   : > { %p987_p11 = pnand %p986_p5, %p980_p9 }
  0x2b   : > { %990 = shalt.err (!%p987_p11)
}
  0x2c   : > { %s1123_s14 = smov 256   ;;  %s1124_s17 = smov 16  }
  0x2d   : > { %902 = dma.hbm_to_vmem [thread:$0]  (!%p1232_p13), %s1410_s2, 4096, %s223_s15, [#allocation4], %s1123_s14, %s1123_s14, %s1124_s17  }
  0x2e   : > { %s991_s23 = scalar_lea.hbm %s1412_s4, 4096 }
  0x2f   : > { %p992_p2 = scmp.ne.s32.totalorder %s1412_s4, %s991_s23  ;;  %p998_p9 = scmp.lt.u32.totalorder %s991_s23, %s1412_s4 }
  0x31   : > { %p994_p5 = pnand %p992_p2, %p965_p1 }
  0x33   : > { %p995_p6 = pneg %p994_p5 }
  0x35   : > { %p1000_p10 = pnand %p998_p9, %p995_p6 }
  0x37   : > { %1003 = shalt.err (!%p1000_p10)
}
  0x38   : > { %s1004_s15 = scalar_lea.vmem %s1236_s18, 4096  ;;  %p1012_p4 = scmp.lt.s32.totalorder %s1236_s18, %s1236_s18 }
  0x39   : > { %p1005_p11 = scmp.ne.s32.totalorder %s1236_s18, %s1004_s15  ;;  %p1013_p7 = scmp.lt.s32.totalorder %s1004_s15, %s1004_s15 }
  0x3b   : > { %p1007_p0 = pnand %p1005_p11, %p965_p1  ;;  %p1014_p8 = por %p1013_p7, %p1012_p4 }
  0x3d   : > { %p1008_p3 = pneg %p1007_p0 }
  0x3f   : > { %p1015_p12 = pnand %p1014_p8, %p1008_p3 }
  0x41   : > { %1018 = shalt.err (!%p1015_p12)
}
  0x42   : > { %s1125_s10 = smov 128   ;;  %s1126_s14 = smov 8  }
  0x43   : > { %905 = dma.hbm_to_vmem [thread:$0]  (!%p1232_p13), %s1412_s4, 4096, %s1236_s18, [#allocation7], %s1125_s10, %s1125_s10, %s1126_s14  }
  0x44   : > { %p1425_p2 = scmp.ne.s32.totalorder %s1423_s13, 0 }
  0x45   : > { %p1426_p1 = scmp.eq.s32.totalorder (!%p1425_p2), %s1193_s28, 0 }
  0x46   : > { %264 = sbr.rel (%p1425_p2) target bundleno = 936 (0x3a8), region = 44 }
  0x4d   : > { %1090 = dma.done.wait (%p1426_p1), [#allocation4], 4096   ;;  %p1427_p5 = pmov %p1426_p1 }
  0x4e   : > { %p1428_p6 = pmov %p1426_p1 }
  0x4f   : > { %1092 = vsyncadd (%p1427_p5), [#allocation4], 4294963200 }
  0x50   : > { %1094 = dma.done.wait (%p1428_p6), [#allocation7], 4096   ;;  %p1429_p9 = pmov %p1426_p1 }
  0x51   : > { %s294_s16 = sand.u32 1, %s1111_s25   ;;  %p299_p13 = scmp.lt.s32.totalorder %s1193_s28, 15 }
  0x52   : > { %1096 = vsyncadd (%p1429_p9), [#allocation7], 4294963200  ;;  %s1299_s13 = sshll.u32 %s294_s16, 3  ;;  %p1430_p10 = scmp.ne.s32.totalorder %s1193_s28, 0 }
  0x53   : > { %s300_s18 = scalar_select %p299_p13, %s1193_s28, 15 }
  0x54   : > { %s296_s29 = scalar_lea.vmem [#allocation8], %s1299_s13  ;;  %306 = sbr.rel (%p1430_p10) target bundleno = 91 (0x5b), region = 56  ;;  %v1127_v0 = vmov (!%p1430_p10), 0.0  }
  0x55   : > { %s765_s20 = sshll.u32 %s300_s18, 3  ;;  %307 = vst [vmem:[#allocation2] sm:$0xff] (!%p1430_p10), %v1127_v0 }
  0x56   : > { %s1305_s23 = scalar_lea.vmem %s1408_s0, %s765_s20 }
  0x5b PF: > { %v315_v1 = vld [vmem:[#allocation3 + $0x8] sm:$0xff]  ;;  %v317_v2 = vld [vmem:[#allocation3 + $0x18] sm:$0xff]  ;;  %v314_v3 = vld [vmem:[#allocation3] sm:$0xff]  ;;  %v1128_v8 = vmov 0.0   ;;  %vm421_vm0 = vcmask 1043456   ;;  %vm1129_vm1 = vmmov 1  }
  0x5c   : > { %v813_v4 = vpack.c.bf16 %v317_v2, %v315_v1  ;;  %v316_v5 = vld [vmem:[#allocation3 + $0x10] sm:$0xff]  ;;  %v319_v6 = vld [vmem:[#allocation3 + $0x28] sm:$0xff]  ;;  %v321_v7 = vld [vmem:[#allocation3 + $0x38] sm:$0xff]  ;;  %410 = vmatprep.mubr.f32.mxu0 %v1128_v8  ;;  %vm417_vm3 = vcmask 97280   ;;  %p771_p11 = scmp.ne.s32.totalorder %s1193_s28, 15 }
  0x5d   : > { %v815_v9 = vpack.c.bf16 %v316_v5, %v314_v3  ;;  %v817_v10 = vpack.c.bf16 %v321_v7, %v319_v6  ;;  %v318_v11 = vld [vmem:[#allocation3 + $0x20] sm:$0xff]  ;;  %v320_v12 = vld [vmem:[#allocation3 + $0x30] sm:$0xff]  ;;  %v323_v13 = vld [vmem:[#allocation3 + $0x48] sm:$0xff] }
  0x5e   : > { %814 = vmatprep.subr.bf16.mxu0 %v813_v4  ;;  %v325_v14 = vld [vmem:[#allocation3 + $0x58] sm:$0xff]  ;;  %v819_v15 = vpack.c.bf16 %v320_v12, %v318_v11  ;;  %v322_v17 = vld [vmem:[#allocation3 + $0x40] sm:$0xff]  ;;  %v324_v18 = vld [vmem:[#allocation3 + $0x50] sm:$0xff] }
  0x5f   : > { %816 = vmatpush1.bf16.msra.mxu0 %v815_v9  ;;  %v821_v16 = vpack.c.bf16 %v325_v14, %v323_v13  ;;  %v327_v19 = vld [vmem:[#allocation3 + $0x68] sm:$0xff]  ;;  %v329_v20 = vld [vmem:[#allocation3 + $0x78] sm:$0xff]  ;;  %v823_v21 = vpack.c.bf16 %v324_v18, %v322_v17  ;;  %v326_v23 = vld [vmem:[#allocation3 + $0x60] sm:$0xff] }
  0x60   : > { %818 = vmatprep.subr.bf16.mxu0 %v817_v10  ;;  %v825_v22 = vpack.c.bf16 %v329_v20, %v327_v19  ;;  %v328_v24 = vld [vmem:[#allocation3 + $0x70] sm:$0xff]  ;;  %v331_v25 = vld [vmem:[#allocation3 + $0x88] sm:$0xff]  ;;  %v333_v26 = vld [vmem:[#allocation3 + $0x98] sm:$0xff] }
  0x61   : > { %v330_v27 = vld [vmem:[#allocation3 + $0x80] sm:$0xff]  ;;  %v827_v28 = vpack.c.bf16 %v328_v24, %v326_v23  ;;  %v332_v29 = vld [vmem:[#allocation3 + $0x90] sm:$0xff]  ;;  %v335_v30 = vld [vmem:[#allocation3 + $0xa8] sm:$0xff]  ;;  %v829_v32 = vpack.c.bf16 %v333_v26, %v331_v25 }
  0x62   : > { %v337_v31 = vld [vmem:[#allocation3 + $0xb8] sm:$0xff]  ;;  %v530_v33 = vld [vmem:[#allocation6 + $0x80] sm:$0xff]  ;;  %v531_v34 = vld [vmem:[#allocation6 + $0x88] sm:$0xff]  ;;  %v831_v45 = vpack.c.bf16 %v332_v29, %v330_v27 }
  0x63   : > { %820 = vmatpush1.bf16.msra.mxu0 %v819_v15  ;;  %v514_v35 = vld [vmem:[#allocation6] sm:$0xff]  ;;  %v851_v36 = vpack.c.bf16 %v531_v34, %v530_v33  ;;  %v515_v37 = vld [vmem:[#allocation6 + $0x8] sm:$0xff]  ;;  %v532_v38 = vld [vmem:[#allocation6 + $0x90] sm:$0xff]  ;;  %v833_v47 = vpack.c.bf16 %v337_v31, %v335_v30 }
  0x64   : > { %822 = vmatprep.subr.bf16.mxu0 %v821_v16  ;;  %v533_v39 = vld [vmem:[#allocation6 + $0x98] sm:$0xff]  ;;  %v853_v40 = vpack.c.bf16 %v515_v37, %v514_v35  ;;  %v516_v42 = vld [vmem:[#allocation6 + $0x10] sm:$0xff]  ;;  %v534_v44 = vld [vmem:[#allocation6 + $0xa0] sm:$0xff] }
  0x65   : > { %v855_v41 = vpack.c.bf16 %v533_v39, %v532_v38  ;;  %v517_v43 = vld [vmem:[#allocation6 + $0x18] sm:$0xff]  ;;  %852 = vmatprep.subr.bf16.mxu1 %v851_v36  ;;  %v535_v46 = vld [vmem:[#allocation6 + $0xa8] sm:$0xff]  ;;  %v334_v48 = vld [vmem:[#allocation3 + $0xa0] sm:$0xff] }
  0x66   : > { %v336_v49 = vld [vmem:[#allocation3 + $0xb0] sm:$0xff]  ;;  %v339_v50 = vld [vmem:[#allocation3 + $0xc8] sm:$0xff]  ;;  %854 = vmatpush3.bf16.msra.mxu1 %v853_v40  ;;  %v857_v51 = vpack.c.bf16 %v517_v43, %v516_v42  ;;  %v341_v52 = vld [vmem:[#allocation3 + $0xd8] sm:$0xff]  ;;  %v859_v53 = vpack.c.bf16 %v535_v46, %v534_v44  ;;  %v501_v44 = vlaneseq }
  0x67   : > { %824 = vmatpush1.bf16.msra.mxu0 %v823_v21  ;;  %856 = vmatprep.subr.bf16.mxu1 %v855_v41  ;;  %v518_v54 = vld [vmem:[#allocation6 + $0x20] sm:$0xff]  ;;  %v519_v55 = vld [vmem:[#allocation6 + $0x28] sm:$0xff]  ;;  %v536_v56 = vld [vmem:[#allocation6 + $0xb0] sm:$0xff]  ;;  %v835_v58 = vpack.c.bf16 %v336_v49, %v334_v48  ;;  %v837_v59 = vpack.c.bf16 %v341_v52, %v339_v50 }
  0x68   : > { %826 = vmatprep.subr.bf16.mxu0 %v825_v22  ;;  %v537_v57 = vld [vmem:[#allocation6 + $0xb8] sm:$0xff]  ;;  %v338_v60 = vld [vmem:[#allocation3 + $0xc0] sm:$0xff]  ;;  %v340_v61 = vld [vmem:[#allocation3 + $0xd0] sm:$0xff]  ;;  %v861_v63 = vpack.c.bf16 %v519_v55, %v518_v54 }
  0x69   : > { %v343_v62 = vld [vmem:[#allocation3 + $0xe8] sm:$0xff]  ;;  %v345_v0 = vld [vmem:[#allocation3 + $0xf8] sm:$0xff]  ;;  %v863_v1 = vpack.c.bf16 %v537_v57, %v536_v56  ;;  %v520_v2 = vld [vmem:[#allocation6 + $0x30] sm:$0xff]  ;;  %v839_v6 = vpack.c.bf16 %v340_v61, %v338_v60 }
  0x6a   : > { %858 = vmatpush3.bf16.msra.mxu1 %v857_v51  ;;  %v521_v3 = vld [vmem:[#allocation6 + $0x38] sm:$0xff]  ;;  %v538_v4 = vld [vmem:[#allocation6 + $0xc0] sm:$0xff]  ;;  %v539_v5 = vld [vmem:[#allocation6 + $0xc8] sm:$0xff]  ;;  %v841_v7 = vpack.c.bf16 %v345_v0, %v343_v62 }
  0x6b   : > { %828 = vmatpush1.bf16.msra.mxu0 %v827_v28  ;;  %860 = vmatprep.subr.bf16.mxu1 %v859_v53  ;;  %v342_v9 = vld [vmem:[#allocation3 + $0xe0] sm:$0xff]  ;;  %v344_v10 = vld [vmem:[#allocation3 + $0xf0] sm:$0xff]  ;;  %v865_v12 = vpack.c.bf16 %v521_v3, %v520_v2  ;;  %v867_v14 = vpack.c.bf16 %v539_v5, %v538_v4  ;;  %v523_v16 = vld [vmem:[#allocation6 + $0x48] sm:$0xff] }
  0x6c   : > { %830 = vmatprep.subr.bf16.mxu0 %v829_v32  ;;  %v311_v11 = vld [vmem:[%s1409_s1 + $0x8] sm:$0xff]  ;;  %v313_v13 = vld [vmem:[%s1409_s1 + $0x18] sm:$0xf]  ;;  %v541_v18 = vld [vmem:[#allocation6 + $0xd8] sm:$0xff]  ;;  %v843_v19 = vpack.c.bf16 %v344_v10, %v342_v9 }
  0x6d   : > { %v522_v15 = vld [vmem:[#allocation6 + $0x40] sm:$0xff]  ;;  %v540_v17 = vld [vmem:[#allocation6 + $0xd0] sm:$0xff]  ;;  %v845_v20 = vpack.c.bf16 %v313_v13, %v311_v11  ;;  %v310_v21 = vld [vmem:[%s1409_s1] sm:$0xff] }
  0x6e   : > { %862 = vmatpush3.bf16.msra.mxu1 %v861_v63  ;;  %v312_v22 = vld [vmem:[%s1409_s1 + $0x10] sm:$0xf]  ;;  %v869_v23 = vpack.c.bf16 %v523_v16, %v522_v15  ;;  %vm1323_vm2 = vmpackc.low %vm421_vm0, %vm1129_vm1  ;;  %v871_v25 = vpack.c.bf16 %v541_v18, %v540_v17  ;;  %v524_v26 = vld [vmem:[#allocation6 + $0x50] sm:$0xff] }
  0x6f   : > { %832 = vmatpush1.bf16.msra.mxu0 %v831_v45  ;;  %864 = vmatprep.subr.bf16.mxu1 %v863_v1  ;;  %v525_v27 = vld [vmem:[#allocation6 + $0x58] sm:$0xff]  ;;  %v542_v28 = vld [vmem:[#allocation6 + $0xe0] sm:$0xff]  ;;  %v543_v29 = vld [vmem:[#allocation6 + $0xe8] sm:$0xff]  ;;  %v848_v31 = vpack.c.bf16 %v312_v22, %v310_v21  ;;  %v502_v45 = vshrl.u32 %v501_v44, 7 }
  0x70   : > { %834 = vmatprep.subr.bf16.mxu0 %v833_v47  ;;  %v309_v30 = vld [vmem:[#allocation2] sm:$0xff]  ;;  %v873_v32 = vpack.c.bf16 %v525_v27, %v524_v26  ;;  %v875_v33 = vpack.c.bf16 %v543_v29, %v542_v28  ;;  %v526_v34 = vld [vmem:[#allocation6 + $0x60] sm:$0xff]  ;;  %v527_v35 = vld [vmem:[#allocation6 + $0x68] sm:$0xff] }
  0x71   : > { %v877_v36 = vpack.c.bf16 %v527_v35, %v526_v34  ;;  %v308_v37 = vld [vmem:[%s1305_s23] sm:$0xff]  ;;  %v544_v38 = vld [vmem:[#allocation6 + $0xf0] sm:$0xff]  ;;  %v503_v46 = vsub.s32 0, %v502_v45  ;;  %v507_v47 = vsub.s32 1, %v502_v45 }
  0x72   : > { %866 = vmatpush3.bf16.msra.mxu1 %v865_v12  ;;  %v545_v39 = vld [vmem:[#allocation6 + $0xf8] sm:$0xff]  ;;  %v528_v41 = vld [vmem:[#allocation6 + $0x70] sm:$0xff] }
  0x73   : > { %836 = vmatpush1.bf16.msra.mxu0 %v835_v58  ;;  %868 = vmatprep.subr.bf16.mxu1 %v867_v14  ;;  %v879_v40 = vpack.c.bf16 %v545_v39, %v544_v38  ;;  %v529_v42 = vld [vmem:[#allocation6 + $0x78] sm:$0xff] }
  0x74   : > { %838 = vmatprep.subr.bf16.mxu0 %v837_v59  ;;  %v881_v43 = vpack.c.bf16 %v529_v42, %v528_v41  ;;  %v770_v56 = vld [vmem:[%s1413_s5] ss:$0 sm:$0xff] }
  0x76   : > { %870 = vmatpush3.bf16.msra.mxu1 %v869_v23 }
  0x77   : > { %840 = vmatpush1.bf16.msra.mxu0 %v839_v6  ;;  %872 = vmatprep.subr.bf16.mxu1 %v871_v25 }
  0x78   : > { %842 = vmatprep.subr.bf16.mxu0 %v841_v7 }
  0x7a   : > { %874 = vmatpush3.bf16.msra.mxu1 %v873_v32 }
  0x7b   : > { %844 = vmatpush1.bf16.msra.mxu0 %v843_v19  ;;  %876 = vmatprep.subr.bf16.mxu1 %v875_v33 }
  0x7c   : > { %847 = vmatprep.subr.msk.bf16.mxu0 %vm1323_vm2, %v845_v20 }
  0x7e   : > { %411 = vmatmul.mubr.f32.vlgmr.msra.gmra.mrb[0].mxu0 %v309_v30  ;;  %878 = vmatpush3.bf16.msra.mxu1 %v877_v36 }
  0x7f   : > { %850 = vmatpush1.bf16.msk.msra.mxu0 %vm1323_vm2, %v848_v31  ;;  %492 = vmatprep.mubr.f32.mxu0 %v1128_v8  ;;  %v499_v8 = vld [vmem:[%s1411_s3] sm:$0x3] }
  0x80   : > { %880 = vmatprep.subr.bf16.mxu1 %v879_v40  ;;  %v504_v48 = vrot.slane %v499_v8, %v503_v46  ;;  %v508_v49 = vrot.slane %v499_v8, %v507_v47 }
  0x82   : > { %882 = vmatpush3.bf16.msra.mxu1 %v881_v43 }
  0x86   : > { %769 = vmatmul.mubr.msk.f32.vlgmr.msra.gmra.mrb[0].mxu0 %vm417_vm3, %v308_v37 }
 0x159   : > { %v494_v50 = vpop.f32.mrb[0].mxu0 }
 0x15a   : > { %v511_v51 = vadd.f32 %v504_v48, %v494_v50  ;;  %v496_v52 = vpop.f32.mrb[1].mxu0 }
 0x15b   : > { %v512_v53 = vadd.f32 %v508_v49, %v496_v52 }
 0x15c   : > { %513 = vst [vmem:[#allocation2] sm:$0xff] %v511_v51  ;;  %638 = vst [vmem:[#allocation9] sm:$0xff] (!%p771_p11), %v511_v51 }
 0x15d   : > { %617 = vmatprep.mubr.f32.mxu1 %v512_v53 }
 0x15e   : > { %618 = vmatmul.mubr.f32.vlgmr.msra.gmra.mrb[0].mxu1 %v511_v51 }
 0x231   : > { %v810_v54 = vpop.f32.mrb[0].mxu1 }
 0x232   : > { %v811_v55 = vpop.f32.mrb[1].mxu1 }
 0x233   : > { %v812_v57 = vadd.f32 %v811_v55, %v810_v54 }
 0x235   : > { %v620_v58 = vadd.f32 %v812_v57, %v770_v56 }
 0x237   : > { %623 = vmax.xlane.f32.xlu0 %v620_v58 }
 0x2c4   : > { %v624_v59 = vpop.xlane.xlu0 %623 }
 0x2c5   : > { %v625_v60 = vsub.f32 %v620_v58, %v624_v59 }
 0x2c7   : > { %v626_v61 = vmul.f32 1.442695, %v625_v60 }
 0x2c9   : > { %959 = vpow2.f32 %v626_v61 }
 0x2d3   : > { %v960_v62 = vpop.eup %959 }
 0x2d4   : > { %628 = vadd.xlane.f32.xlu0 %v960_v62 }
 0x361   : > { %v629_v63 = vpop.xlane.xlu0 %628 }
 0x362   : > { %961 = vlog2.f32 %v629_v63 }
 0x36b   : > { %637 = sbr.rel (%p771_p11) target bundleno = 882 (0x372), region = 60 }
 0x36c   : > { %v962_v0 = vpop.eup %961 }
 0x36d   : > { %v631_v1 = vmul.f32 0.6931472, %v962_v0 }
 0x36f   : > { %v632_v2 = vsub.f32 %v625_v60, %v631_v1 }
 0x371   : > { %633 = vst [vmem:[%s296_s29] sm:$0xff] %v632_v2 }
 0x372 PF: > { %s773_s8 = sshll.u32 %s1193_s28, 7  ;;  %s653_s14 = sshll.u32 %s296_s29, 4  ;;  %s654_s14 = int_to_ptr.vmem [resolvable:$true] %s653_s14 }
 0x373   : > { %s1346_s10 = scalar_lea.hbm %s1414_s6, %s773_s8  ;;  %s640_s17 = scalar_lea.sflag [#allocation5], %s294_s16 }
 0x374   : > { %s1019_s19 = scalar_lea.vmem %s654_s14, 128  ;;  %p1433_p3 = scmp.ne.s32.totalorder %s1421_s11, 0 }
 0x375   : > { %p1020_p0 = scmp.ne.s32.totalorder %s654_s14, %s1019_s19  ;;  %s1130_s18 = smov [#allocation8]  }
 0x376   : > { %s1023_s20 = sshll.u32 %s1130_s18, 4  ;;  %s1024_s20 = int_to_ptr.vmem [resolvable:$false] %s1023_s20 }
 0x377   : > { %p1021_p4 = pnand %p1020_p0, %p1433_p3  ;;  %s1025_s21 = scalar_lea.vmem %s1024_s20, 256 }
 0x378   : > { %p1026_p8 = scmp.lt.s32.totalorder %s654_s14, %s1024_s20  ;;  %p1027_p12 = scmp.lt.s32.totalorder %s1025_s21, %s1019_s19 }
 0x379   : > { %p1022_p7 = pneg %p1021_p4 }
 0x37a   : > { %p1028_p2 = por %p1027_p12, %p1026_p8 }
 0x37c   : > { %p1029_p1 = pnand %p1028_p2, %p1022_p7 }
 0x37e   : > { %1032 = shalt.err (!%p1029_p1)
}
 0x37f   : > { %s1033_s16 = scalar_lea.hbm %s1346_s10, 128  ;;  %s1037_s22 = scalar_lea.hbm %s1414_s6, 2048 }
 0x380   : > { %p1034_p5 = scmp.ne.s32.totalorder %s1346_s10, %s1033_s16  ;;  %p1038_p13 = scmp.lt.u32.totalorder %s1346_s10, %s1414_s6 }
 0x381   : > { %p1039_p10 = scmp.lt.u32.totalorder %s1037_s22, %s1033_s16  ;;  %p1041_p0 = scmp.lt.u32.totalorder %s1033_s16, %s1346_s10 }
 0x382   : > { %p1035_p6 = pnand %p1034_p5, %p1433_p3 }
 0x383   : > { %p1040_p11 = por %p1039_p10, %p1038_p13 }
 0x384   : > { %p1036_p9 = pneg %p1035_p6 }
 0x385   : > { %p1042_p4 = por %p1041_p0, %p1040_p11 }
 0x387   : > { %p1043_p7 = pnand %p1042_p4, %p1036_p9 }
 0x389   : > { %1046 = shalt.err (!%p1043_p7)
}
 0x38a   : > { %893 = dma.vmem_to_hbm [thread:$0]  (%p1433_p3), %s654_s14, 128, %s1346_s10, %s640_s17  }
 0x38b   : > { %s1131_s9 = smov [#allocation9]   ;;  %p1434_p12 = scmp.eq.s32.totalorder %s1193_s28, 15 }
 0x38c   : > { %s664_s15 = sshll.u32 %s1131_s9, 4  ;;  %s665_s15 = int_to_ptr.vmem [resolvable:$true] %s664_s15 }
 0x38d   : > { %s1047_s19 = scalar_lea.vmem %s665_s15, 128  ;;  %p1054_p5 = scmp.lt.s32.totalorder %s665_s15, %s665_s15 }
 0x38e   : > { %p1048_p8 = scmp.ne.s32.totalorder %s665_s15, %s1047_s19  ;;  %p1055_p6 = scmp.lt.s32.totalorder %s1047_s19, %s1047_s19 }
 0x390   : > { %p1049_p2 = pnand %p1048_p8, %p1434_p12  ;;  %p1056_p13 = por %p1055_p6, %p1054_p5 }
 0x392   : > { %p1050_p1 = pneg %p1049_p2 }
 0x394   : > { %p1057_p10 = pnand %p1056_p13, %p1050_p1 }
 0x396   : > { %1060 = shalt.err (!%p1057_p10)
}
 0x397   : > { %s1061_s11 = scalar_lea.hbm %s1415_s7, 128  ;;  %p1435_p9 = pmov %p1434_p12 }
 0x398   : > { %p1062_p3 = scmp.ne.s32.totalorder %s1415_s7, %s1061_s11  ;;  %p1067_p4 = scmp.lt.u32.totalorder %s1061_s11, %s1415_s7 }
 0x39a   : > { %p1063_p11 = pnand %p1062_p3, %p1435_p9 }
 0x39c   : > { %p1064_p0 = pneg %p1063_p11 }
 0x39e   : > { %p1069_p7 = pnand %p1067_p4, %p1064_p0 }
 0x3a0   : > { %1072 = shalt.err (!%p1069_p7)
}
 0x3a1   : > { %p1436_p8 = pmov %p1435_p9 }
 0x3a3   : > { %895 = dma.vmem_to_hbm [thread:$0]  (%p1436_p8), %s665_s15, 128, %s1415_s7, [#allocation10]  }
 0x3a4   : > { %p1437_p12 = pmov %p1436_p8 }
 0x3a5   : > { %p1438_p2 = pmov %p1436_p8 }
 0x3a6   : > { %1098 = dma.done.wait (%p1437_p12), [#allocation10], 128  }
 0x3a7   : > { %1100 = vsyncadd (%p1438_p2), [#allocation10], 4294967168 }
 0x3a8 PF: > { %p916_p1 = scmp.ge.s32.totalorder %s1119_s27, 2  ;;  %s680_s29 = sand.u32 1, %s1107_s24  }
 0x3a9   : > { %p1439_p5 = scmp.ne.s32.totalorder %s1422_s12, 0  ;;  %s681_s22 = scalar_lea.sflag [#allocation5], %s680_s29 }
 0x3ab   : > { %p907_p6 = pnand %p916_p1, %p1439_p5 }
 0x3ad   : > { %1102 = dma.done.wait (!%p907_p6), %s681_s22, 128  }
 0x3ae   : > { %1104 = vsyncadd (!%p907_p6), %s681_s22, 4294967168  ;;  %s1440_s23 = sld [smem:[#allocation15_spill]]  ;;  %p21_p13 = scmp.ge.s32.totalorder %s1197_s30, 18  }
 0x3af   : > { %s1441_s24 = smov %s1111_s25  ;;  %s1442_s25 = smov %s1115_s26 }
 0x3b0   : > { %s1444_s27 = smov %s1197_s30  ;;  %23 = sbr.rel (!%p21_p13) target bundleno = 6 (0x6), region = 104 }
 0x3b4   : > { %s1443_s26 = smov %s1440_s23 }
 0x3b7   :  { %686 = vsyncpa [#allocation4], 1 }
 0x3b8   :  { %688 = vsyncpa [#allocation4 + $0x1], 1 }
 0x3b9   :  { %689 = vsyncpa [#allocation7], 1 }
 0x3ba   :  { %690 = vsyncpa [#allocation5], 1 }
 0x3bb   :  { %692 = vsyncpa [#allocation5 + $0x1], 1 }
 0x3bc   :  { %693 = vsyncpa [#allocation10], 1 }

</bundles_post_ra>
